<compile_context>
chip_gen: v7x
topology: tpu7x:2x2x1
jax: 0.10.0
libtpu: 0.0.40
codegen_flags: <defaults>
</compile_context>

<pallas_src>
import jax
import jax.numpy as jnp
from jax.experimental import pallas as pl
from jax.experimental.pallas import tpu as pltpu


# ----------------------------- Params ------------------------------------
EVAL_LENGTH = 30
OVERLAP_LENGTH = 2
TIME_STEP = EVAL_LENGTH + OVERLAP_LENGTH      # 32  (params.eval_length + params.overlap_length)
FC_LENGTH = TIME_STEP                          # 32
INPUT_DIM = 4
N_BLOCKS = 2
FEAT = TIME_STEP * INPUT_DIM                   # 128 (lane-aligned)

SUBLANE = 8
LANE = 128


def _round_up(x, m):
    return ((x + m - 1) // m) * m


# ----------------------------- Kernel ------------------------------------
def decode_fused_kernel(x_ref, w_ref, t_ref, o_ref):
    """All decode-loop iterations fused: forward (FC) + codeword_threshold.

    x_ref: (Npad, FEAT)      all blocks, flattened, rows padded to multiple of 8
    w_ref: (FEAT, FCpad)     FC weight, columns zero-padded to multiple of 128
    t_ref: (1, FCpad)        folded threshold (0.5 - bias), +inf in padded lanes
    o_ref: (Npad, FCpad)     hard-thresholded codeword bits (float 0/1)
    """
    y = jnp.dot(x_ref[...], w_ref[...], preferred_element_type=jnp.float32)
    # codeword_threshold: (x@w + b) >= 0.5  <=>  x@w >= (0.5 - b)
    o_ref[...] = jnp.where(y >= t_ref[...], 1.0, 0.0).astype(o_ref.dtype)


def decode(eval_length, data_eval, w, b):
    """Pallas equivalent of BaseModel.decode.

    data_eval: (n_blocks, time_step, input_dim) float32
    w:         (time_step*input_dim, fc_length)  float32
    b:         (1, fc_length)                    float32
    returns:   (1, n_blocks * eval_length) float32 hard decisions
    """
    n, t, d = data_eval.shape
    feat = t * d
    fc = w.shape[1]

    n_pad = _round_up(n, SUBLANE)     # sublane-dense rows
    fc_pad = _round_up(fc, LANE)      # lane-dense output columns

    # glue: flatten per-block features; pad rows / output lanes with zeros.
    x = data_eval.reshape(n, feat)
    x_p = jnp.zeros((n_pad, feat), jnp.float32).at[:n, :].set(x)
    w_p = jnp.zeros((feat, fc_pad), jnp.float32).at[:, :fc].set(w)
    # fold bias into threshold; padded lanes get +inf so they threshold to 0
    # (they are sliced away below anyway).
    t_p = jnp.full((1, fc_pad), jnp.inf, dtype=jnp.float32).at[:, :fc].set(0.5 - b)

    hard = pl.pallas_call(
        decode_fused_kernel,
        out_shape=jax.ShapeDtypeStruct((n_pad, fc_pad), jnp.float32),
        # No grid: single invocation, whole (tiny) arrays resident in VMEM.
        in_specs=[
            pl.BlockSpec(memory_space=pltpu.MemorySpace.VMEM),
            pl.BlockSpec(memory_space=pltpu.MemorySpace.VMEM),
            pl.BlockSpec(memory_space=pltpu.MemorySpace.VMEM),
        ],
        out_specs=pl.BlockSpec(memory_space=pltpu.MemorySpace.VMEM),
    )(x_p, w_p, t_p)

    # dec = torch.cat((dec, dec_block[:, :eval_length]), dim=1)
    dec = hard[:n, :eval_length].reshape(1, n * eval_length)
    return dec


# ----------------------------- Reference ---------------------------------
def decode_ref(eval_length, data_eval, w, b):
    n, t, d = data_eval.shape
    x = data_eval.reshape(n, t * d)
    y = jnp.dot(x, w, preferred_element_type=jnp.float32) + b
    hard = jnp.where(y >= 0.5, 1.0, 0.0)
    return hard[:, :eval_length].reshape(1, n * eval_length)


# ----------------------------- Main --------------------------------------
if __name__ == "__main__":
    key = jax.random.PRNGKey(0)
    (k_x,) = jax.random.split(key, 1)

    # deterministic example input: (n_blocks, time_step, input_dim)
    data_eval = jax.random.normal(
        k_x, (N_BLOCKS, TIME_STEP, INPUT_DIM), dtype=jnp.float32
    )

    # deterministic parameter init (no checkpoint loading)
    w = ((jnp.arange(FEAT * FC_LENGTH, dtype=jnp.float32) % 13.0) - 6.0) * 0.02
    w = w.reshape(FEAT, FC_LENGTH)
    b = jnp.full((1, FC_LENGTH), 0.1, dtype=jnp.float32)

    dec = decode(EVAL_LENGTH, data_eval, w, b)
    dec = jax.block_until_ready(dec)

    ref = decode_ref(EVAL_LENGTH, data_eval, w, b)
    assert dec.shape == (1, N_BLOCKS * EVAL_LENGTH), dec.shape
    assert jnp.array_equal(dec, ref), "mismatch vs reference"

    print("KERNEL_OK")
</pallas_src>

<mosaic_0001>
module attributes {stable_mosaic.version = 11 : i64} {
  func.func @decode_fused_kernel(%arg0: memref<8x128xf32, #tpu.memory_space<vmem>>, %arg1: memref<128x128xf32, #tpu.memory_space<vmem>>, %arg2: memref<1x128xf32, #tpu.memory_space<vmem>>, %arg3: memref<8x128xf32, #tpu.memory_space<vmem>>) attributes {dimension_semantics = [], scalar_prefetch = 0 : i64, scratch_operands = 0 : i64, tpu.core_type = #tpu.core_type<tc>} {
    %c0 = arith.constant 0 : index
    %c0_0 = arith.constant 0 : index
    %0 = vector.load %arg0[%c0, %c0_0] : memref<8x128xf32, #tpu.memory_space<vmem>>, vector<8x128xf32>
    %c0_1 = arith.constant 0 : index
    %c0_2 = arith.constant 0 : index
    %1 = vector.load %arg1[%c0_1, %c0_2] : memref<128x128xf32, #tpu.memory_space<vmem>>, vector<128x128xf32>
    %cst = arith.constant dense<0.000000e+00> : vector<8x128xf32>
    %2 = tpu.matmul %0, %1, %cst {dimension_numbers = #tpu.dot_dimension_numbers<[1], [0], [0], [1], [0, 0, 1, 1], [], []>} : vector<8x128xf32>, vector<128x128xf32>, vector<8x128xf32> -> vector<8x128xf32>
    %c0_3 = arith.constant 0 : index
    %c0_4 = arith.constant 0 : index
    %3 = vector.load %arg2[%c0_3, %c0_4] : memref<1x128xf32, #tpu.memory_space<vmem>>, vector<1x128xf32>
    %4 = vector.broadcast %3 : vector<1x128xf32> to vector<8x128xf32>
    %5 = arith.cmpf oge, %2, %4 : vector<8x128xf32>
    %cst_5 = arith.constant 1.000000e+00 : f32
    %cst_6 = arith.constant 0.000000e+00 : f32
    %6 = vector.broadcast %cst_5 : f32 to vector<8x128xf32>
    %7 = vector.broadcast %cst_6 : f32 to vector<8x128xf32>
    %8 = arith.select %5, %6, %7 : vector<8x128xi1>, vector<8x128xf32>
    %c0_7 = arith.constant 0 : index
    %c0_8 = arith.constant 0 : index
    %9 = vector.load %arg3[%c0_7, %c0_8] : memref<8x128xf32, #tpu.memory_space<vmem>>, vector<8x128xf32>
    tpu.vector_store %arg3[%c0_7, %c0_8], %8 {strides = array<i32>} : memref<8x128xf32, #tpu.memory_space<vmem>>, vector<8x128xf32>,
    return
  }
}

</mosaic_0001>

<bundles_post_ra>
// kernel: tpu_custom_call.1
= control target key start
LH: loop header
LB: loop body
LE: loop exit
PB: predicated region body
PF: predicated region fallthrough
CT: control target
= control target key end

     0   :  { %8 = vsyncpa [#allocation3], 0  ;;  %s385_s0 = inlined_call_operand.hbm [shape: f32[8,128], index: 0, kind: input, shape index: {}]   ;;  %s386_s1 = inlined_call_operand.hbm [shape: f32[128,128], index: 1, kind: input, shape index: {}]   ;;  %s387_s2 = inlined_call_operand.vmem [shape: f32[1,128], index: 2, kind: input, shape index: {}]   ;;  %s388_s3 = inlined_call_operand.hbm [shape: f32[8,128], index: 3, kind: output, shape index: {}]  }
   0x1   :  { %9 = vsyncpa [#allocation6], 0 }
   0x2   :  { %10 = vsyncpa [#allocation4], 0  ;;  %s311_s12 = smov [#allocation2]   ;;  %s312_s14 = smov [#allocation5]  }
   0x3   :  { %s17_s13 = sshll.u32 %s311_s12, 4  ;;  %s26_s15 = sshll.u32 %s312_s14, 4  ;;  %s18_s13 = int_to_ptr.vmem [resolvable:$true] %s17_s13  ;;  %s339_s15 = int_to_ptr.vmem [resolvable:$true] %s26_s15 }
   0x4   :  { %s239_s18 = scalar_lea.hbm %s385_s0, 128 }
   0x5   :  { %p240_p0 = scmp.ne.s32.totalorder %s385_s0, %s239_s18  ;;  %p243_p1 = scmp.lt.u32.totalorder %s239_s18, %s385_s0 }
   0x7   :  { %p245_p2 = pnand %p243_p1, %p240_p0 }
   0x9   :  { %248 = shalt.err (!%p245_p2)
}
   0xa   :  { %s249_s23 = scalar_lea.vmem %s18_s13, 128  ;;  %p254_p4 = scmp.lt.s32.totalorder %s18_s13, %s18_s13 }
   0xb   :  { %p250_p3 = scmp.ne.s32.totalorder %s18_s13, %s249_s23  ;;  %p255_p5 = scmp.lt.s32.totalorder %s249_s23, %s249_s23 }
   0xd   :  { %p256_p6 = por %p255_p5, %p254_p4 }
   0xf   :  { %p257_p7 = pnand %p256_p6, %p250_p3 }
  0x11   :  { %260 = shalt.err (!%p257_p7)
}
  0x12   :  { %20 = dma.hbm_to_vmem [thread:$0]  %s385_s0, 128, %s18_s13, [#allocation3]  }
  0x13   :  { %s261_s28 = scalar_lea.hbm %s386_s1, 2048 }
  0x14   :  { %p262_p8 = scmp.ne.s32.totalorder %s386_s1, %s261_s28  ;;  %p265_p9 = scmp.lt.u32.totalorder %s261_s28, %s386_s1 }
  0x16   :  { %p267_p10 = pnand %p265_p9, %p262_p8 }
  0x18   :  { %270 = shalt.err (!%p267_p10)
}
  0x19   :  { %s271_s6 = scalar_lea.vmem %s339_s15, 2048  ;;  %p276_p12 = scmp.lt.s32.totalorder %s339_s15, %s339_s15 }
  0x1a   :  { %p272_p11 = scmp.ne.s32.totalorder %s339_s15, %s271_s6  ;;  %p277_p13 = scmp.lt.s32.totalorder %s271_s6, %s271_s6 }
  0x1c   :  { %p278_p0 = por %p277_p13, %p276_p12 }
  0x1e   :  { %p279_p1 = pnand %p278_p0, %p272_p11 }
  0x20   :  { %282 = shalt.err (!%p279_p1)
}
  0x21   :  { %s313_s0 = smov 128   ;;  %s314_s7 = smov 8  }
  0x22   :  { %32 = dma.hbm_to_vmem [thread:$0]  %s386_s1, 2048, %s339_s15, [#allocation6], %s313_s0, %s313_s0, %s314_s7  }
  0x23   :  { %305 = dma.done.wait [#allocation3], 128  }
  0x24   :  { %306 = vsyncadd [#allocation3], 4294967168 }
  0x25   :  { %307 = dma.done.wait [#allocation6], 2048  }
  0x26   :  { %308 = vsyncadd [#allocation6], 4294965248  ;;  %v315_v0 = vmov 0.0|0.0   ;;  %vm316_vm0 = vmmov 0   ;;  %v317_v1 = vmov 0.0   ;;  %v42_v2 = vld [vmem:[#allocation5] sm:$0xff] }
  0x27   :  { %207 = vmatprep.subr.bf16.mxu0 %v315_v0  ;;  %204 = vmatprep.mubr.msk.f32.mxu0 %vm316_vm0, %v317_v1  ;;  %v43_v3 = vld [vmem:[#allocation5 + $0x8] sm:$0xff]  ;;  %v44_v4 = vld [vmem:[#allocation5 + $0x10] sm:$0xff]  ;;  %v45_v6 = vld [vmem:[#allocation5 + $0x18] sm:$0xff]  ;;  %s318_s11 = smov [#allocation7]  }
  0x28   :  { %v208_v5 = vpack.c.bf16 %v43_v3, %v42_v2  ;;  %v211_v7 = vpack.c.bf16 %v45_v6, %v44_v4  ;;  %v46_v8 = vld [vmem:[#allocation5 + $0x20] sm:$0xff]  ;;  %v47_v9 = vld [vmem:[#allocation5 + $0x28] sm:$0xff]  ;;  %v48_v11 = vld [vmem:[#allocation5 + $0x30] sm:$0xff]  ;;  %s144_s12 = sshll.u32 %s318_s11, 4  ;;  %s145_s12 = int_to_ptr.vmem [resolvable:$true] %s144_s12 }
  0x29   :  { %v214_v10 = vpack.c.bf16 %v47_v9, %v46_v8  ;;  %v49_v12 = vld [vmem:[#allocation5 + $0x38] sm:$0xff]  ;;  %v50_v14 = vld [vmem:[#allocation5 + $0x40] sm:$0xff]  ;;  %v51_v15 = vld [vmem:[#allocation5 + $0x48] sm:$0xff]  ;;  %s283_s13 = scalar_lea.vmem %s145_s12, 128  ;;  %p288_p3 = scmp.lt.s32.totalorder %s145_s12, %s145_s12 }
  0x2a   :  { %209 = vmatpush3.bf16.msra.mxu0 %v208_v5  ;;  %v217_v13 = vpack.c.bf16 %v49_v12, %v48_v11  ;;  %v220_v16 = vpack.c.bf16 %v51_v15, %v50_v14  ;;  %v52_v17 = vld [vmem:[#allocation5 + $0x50] sm:$0xff]  ;;  %v53_v18 = vld [vmem:[#allocation5 + $0x58] sm:$0xff]  ;;  %v54_v20 = vld [vmem:[#allocation5 + $0x60] sm:$0xff]  ;;  %p284_p2 = scmp.ne.s32.totalorder %s145_s12, %s283_s13  ;;  %p289_p4 = scmp.lt.s32.totalorder %s283_s13, %s283_s13 }
  0x2b   :  { %210 = vmatprep.subr.bf16.mxu0 %v315_v0  ;;  %v223_v19 = vpack.c.bf16 %v53_v18, %v52_v17  ;;  %v55_v21 = vld [vmem:[#allocation5 + $0x68] sm:$0xff]  ;;  %v56_v23 = vld [vmem:[#allocation5 + $0x70] sm:$0xff]  ;;  %v57_v24 = vld [vmem:[#allocation5 + $0x78] sm:$0xff] }
  0x2c   :  { %v226_v22 = vpack.c.bf16 %v55_v21, %v54_v20  ;;  %v229_v25 = vpack.c.bf16 %v57_v24, %v56_v23  ;;  %v41_v26 = vld [vmem:[#allocation2] sm:$0xff]  ;;  %p290_p5 = por %p289_p4, %p288_p3 }
  0x2d   :  { %v154_v27 = vld [vmem:[%s387_s2] ss:$0 sm:$0xff] }
  0x2e   :  { %212 = vmatpush3.bf16.msra.mxu0 %v211_v7  ;;  %p291_p6 = pnand %p290_p5, %p284_p2 }
  0x2f   :  { %213 = vmatprep.subr.bf16.mxu0 %v315_v0 }
  0x32   :  { %215 = vmatpush3.bf16.msra.mxu0 %v214_v10 }
  0x33   :  { %216 = vmatprep.subr.bf16.mxu0 %v315_v0 }
  0x36   :  { %218 = vmatpush3.bf16.msra.mxu0 %v217_v13 }
  0x37   :  { %219 = vmatprep.subr.bf16.mxu0 %v315_v0 }
  0x3a   :  { %221 = vmatpush3.bf16.msra.mxu0 %v220_v16 }
  0x3b   :  { %222 = vmatprep.subr.bf16.mxu0 %v315_v0 }
  0x3e   :  { %224 = vmatpush3.bf16.msra.mxu0 %v223_v19 }
  0x3f   :  { %225 = vmatprep.subr.bf16.mxu0 %v315_v0 }
  0x42   :  { %227 = vmatpush3.bf16.msra.mxu0 %v226_v22 }
  0x43   :  { %228 = vmatprep.subr.bf16.mxu0 %v315_v0 }
  0x46   :  { %230 = vmatpush3.bf16.msra.mxu0 %v229_v25 }
  0x49   :  { %205 = vmatmul.mubr.f32.vlgmr.msra.gmra.mrb[0].mxu0 %v41_v26 }
 0x11c   :  { %v124_v28 = vpop.f32.mrb[0].mxu0 }
 0x11d   :  { %vm135_vm1 = vcmp.ge.f32.partialorder %v124_v28, %v154_v27  ;;  %v206_v29 = vpop.f32.mrb[1].mxu0 }
 0x11e   :  { %v136_v30 = vsel %vm135_vm1, 1.0, %v317_v1 }
 0x11f   :  { %137 = vst [vmem:[#allocation7] sm:$0xff] %v136_v30 }
 0x120   :  { %294 = shalt.err (!%p291_p6)
}
 0x121   :  { %s295_s16 = scalar_lea.hbm %s388_s3, 128 }
 0x122   :  { %p296_p7 = scmp.ne.s32.totalorder %s388_s3, %s295_s16  ;;  %p299_p8 = scmp.lt.u32.totalorder %s295_s16, %s388_s3 }
 0x124   :  { %p301_p9 = pnand %p299_p8, %p296_p7 }
 0x126   :  { %304 = shalt.err (!%p301_p9)
}
 0x127   :  { %147 = dma.vmem_to_hbm [thread:$0]  %s145_s12, 128, %s388_s3, [#allocation4]  }
 0x128   :  { %309 = dma.done.wait [#allocation4], 128  }
 0x129   :  { %310 = vsyncadd [#allocation4], 4294967168 }
 0x12a   :  { %151 = vsyncpa [#allocation3], 1 }
 0x12b   :  { %152 = vsyncpa [#allocation6], 1 }
 0x12c   :  { %153 = vsyncpa [#allocation4], 1 }

</bundles_post_ra>
